<compile_context>
chip_gen: v7x
topology: tpu7x:2x2x1
jax: 0.10.0
libtpu: 0.0.40
codegen_flags: <defaults>
</compile_context>

<pallas_src>
import functools

import jax
import jax.numpy as jnp
from jax import lax
from jax.experimental import pallas as pl
from jax.experimental.pallas import tpu as pltpu


def edge_heatmap_kernel(edge_attr_ref, src_ref, dst_ref, w_ref, b_ref,
                        wrow_ref, bout_ref, out_ref, *, num_nodes):
    G, E, D = edge_attr_ref.shape
    N = num_nodes

    # --- hidden MLP over all G*E edges as one (G*E, D) slab (MXU) ---
    x = edge_attr_ref[...].reshape(G * E, D)
    n_hidden = w_ref.shape[0]
    for l in range(n_hidden):                        # static unroll, L-1 is small
        h = jnp.dot(x, w_ref[l], preferred_element_type=jnp.float32)
        h = h + b_ref[pl.ds(l, 1), :]                # (G*E, D) + (1, D)
        x = h * jax.nn.sigmoid(h)                    # SiLU

    # --- output layer (D -> 1): VPU multiply + lane reduce (no 1-col matmul) ---
    v = jnp.sum(x * wrow_ref[...], axis=-1, keepdims=True) + bout_ref[0, 0]
    v = jax.nn.sigmoid(v).reshape(G, E, 1)           # per-edge heat value in (0,1)

    # --- scatter: heat[g,i,j] = sum_e [src==i] * v_e * [dst==j]   (MXU) ---
    # TODO(synk): duplicate (src,dst) pairs accumulate (sum) here, whereas the
    # torch scatter-assign is last-write-wins; identical when edges are unique.
    rows = lax.broadcasted_iota(jnp.int32, (G, N, E), 1)
    cols = lax.broadcasted_iota(jnp.int32, (G, E, N), 2)
    src_oh = (rows == src_ref[...]).astype(jnp.float32)          # (G, N, E)
    dst_ohv = (cols == dst_ref[...]).astype(jnp.float32) * v     # (G, E, N)
    heat = jnp.einsum('gie,gej->gij', src_oh, dst_ohv,
                      preferred_element_type=jnp.float32)        # (G, N, N)

    out_ref[...] = jnp.log(heat + 1e-10)


def _group_size(batch, edges_per_graph, target_rows=256):
    """Largest divisor G of `batch` with G*E <= target rows, keeping >= 2 grid
    steps whenever possible (pipelining + v7x megacore sharding)."""
    best = 1
    for g in range(1, batch + 1):
        if batch % g:
            continue
        if g * edges_per_graph > target_rows:
            break
        if batch < 2 or batch // g >= 2:
            best = g
    return best


def edge_heatmap_generator(edge_attr, edge_index, weights, biases, wout, bout,
                           num_nodes):
    B, E, D = edge_attr.shape
    N = num_nodes
    G = _group_size(B, E)

    # Pre-split indices so the kernel never lane-slices the (E, 2) pair array.
    src = edge_index[..., 0].astype(jnp.int32).reshape(B, 1, E)
    dst = edge_index[..., 1].astype(jnp.int32).reshape(B, E, 1)
    wrow = wout.reshape(1, D).astype(jnp.float32)     # output weight as a row
    bout2 = bout.reshape(1, 1).astype(jnp.float32)

    kernel = functools.partial(edge_heatmap_kernel, num_nodes=N)

    return pl.pallas_call(
        kernel,
        out_shape=jax.ShapeDtypeStruct((B, N, N), jnp.float32),
        grid_spec=pltpu.PrefetchScalarGridSpec(
            num_scalar_prefetch=0,
            grid=(B // G,),
            in_specs=[
                pl.BlockSpec((G, E, D), lambda b: (b, 0, 0)),       # edge_attr
                pl.BlockSpec((G, 1, E), lambda b: (b, 0, 0)),       # src
                pl.BlockSpec((G, E, 1), lambda b: (b, 0, 0)),       # dst
                pl.BlockSpec(weights.shape, lambda b: (0, 0, 0)),   # hidden W (shared)
                pl.BlockSpec(biases.shape, lambda b: (0, 0)),       # hidden b (shared)
                pl.BlockSpec(wrow.shape, lambda b: (0, 0)),         # output W row
                pl.BlockSpec(memory_space=pltpu.MemorySpace.SMEM),  # output bias scalar
            ],
            out_specs=pl.BlockSpec((G, N, N), lambda b: (b, 0, 0)),
        ),
        compiler_params=pltpu.CompilerParams(
            dimension_semantics=("parallel",)),
    )(edge_attr, src, dst, weights, biases, wrow, bout2)


if __name__ == "__main__":
    B, N, E, D, num_layers = 2, 16, 32, 32, 3   # batch, nodes, edges/graph, embed_dim

    key = jax.random.PRNGKey(0)
    k1, k2, k3, k4, k5, k6 = jax.random.split(key, 6)

    # Deterministic parameter init (nn.Linear-style uniform(-1/sqrt(D), 1/sqrt(D))).
    scale = 1.0 / float(jnp.sqrt(jnp.float32(D)))
    weights = jax.random.uniform(k1, (num_layers - 1, D, D),
                                 minval=-scale, maxval=scale, dtype=jnp.float32)
    biases = jax.random.uniform(k2, (num_layers - 1, D),
                                minval=-scale, maxval=scale, dtype=jnp.float32)
    wout = jax.random.uniform(k3, (D, 1), minval=-scale, maxval=scale,
                              dtype=jnp.float32)
    bout = jax.random.uniform(k4, (1, 1), minval=-scale, maxval=scale,
                              dtype=jnp.float32)

    # Synthetic batched graph: E unique (src, dst) pairs per graph.
    edge_attr = jax.random.normal(k5, (B, E, D), dtype=jnp.float32)

    def make_edges(k):
        perm = jax.random.permutation(k, N * N)[:E]
        return jnp.stack([perm // N, perm % N], axis=-1).astype(jnp.int32)

    ekeys = jax.random.split(k6, B)
    edge_index = jnp.stack([make_edges(ek) for ek in ekeys], axis=0)   # (B, E, 2)

    out = edge_heatmap_generator(edge_attr, edge_index, weights, biases,
                                 wout, bout, N)
    jax.block_until_ready(out)

    # Pure-JAX reference (mirrors the PyTorch forward semantics).
    x = edge_attr
    for l in range(num_layers - 1):
        h = x @ weights[l] + biases[l]
        x = h * jax.nn.sigmoid(h)
    v = jax.nn.sigmoid(x @ wout + bout[0])          # (B, E, 1)
    heat = jnp.zeros((B, N, N), jnp.float32)
    bidx = jnp.arange(B)[:, None]
    heat = heat.at[bidx, edge_index[..., 0], edge_index[..., 1]].set(v[..., 0])
    ref = jnp.log(heat + 1e-10)

    assert out.shape == (B, N, N)
    assert jnp.allclose(out, ref, atol=1e-4, rtol=1e-4), \
        float(jnp.max(jnp.abs(out - ref)))
    print("KERNEL_OK")
</pallas_src>

<mosaic_0001>
module attributes {stable_mosaic.version = 11 : i64} {
  func.func @edge_heatmap_kernel(%arg0: i32, %arg1: memref<1x32x32xf32, #tpu.memory_space<vmem>>, %arg2: memref<1x1x32xi32, #tpu.memory_space<vmem>>, %arg3: memref<1x32x1xi32, #tpu.memory_space<vmem>>, %arg4: memref<2x32x32xf32, #tpu.memory_space<vmem>>, %arg5: memref<2x32xf32, #tpu.memory_space<vmem>>, %arg6: memref<1x32xf32, #tpu.memory_space<vmem>>, %arg7: memref<1x1xf32, #tpu.memory_space<smem>>, %arg8: memref<1x16x16xf32, #tpu.memory_space<vmem>>) attributes {dimension_semantics = [#tpu.dimension_semantics<parallel>], iteration_bounds = array<i64: 2>, scalar_prefetch = 0 : i64, scratch_operands = 0 : i64, tpu.core_type = #tpu.core_type<tc>, window_params = [{transform_indices = @transform_0, window_bounds = array<i64: 1, 32, 32>}, {transform_indices = @transform_1, window_bounds = array<i64: 1, 1, 32>}, {transform_indices = @transform_2, window_bounds = array<i64: 1, 32, 1>}, {pipeline_mode = #tpu.pipeline_mode<synchronous>, transform_indices = @transform_3, window_bounds = array<i64: 2, 32, 32>}, {pipeline_mode = #tpu.pipeline_mode<synchronous>, transform_indices = @transform_4, window_bounds = array<i64: 2, 32>}, {pipeline_mode = #tpu.pipeline_mode<synchronous>, transform_indices = @transform_5, window_bounds = array<i64: 1, 32>}, {transform_indices = @transform_6, window_bounds = array<i64: 1, 1>}, {transform_indices = @transform_7, window_bounds = array<i64: 1, 16, 16>}]} {
    %c0 = arith.constant 0 : index
    %c0_0 = arith.constant 0 : index
    %c0_1 = arith.constant 0 : index
    %0 = vector.load %arg1[%c0, %c0_0, %c0_1] : memref<1x32x32xf32, #tpu.memory_space<vmem>>, vector<1x32x32xf32>
    %1 = vector.shape_cast %0 : vector<1x32x32xf32> to vector<32x32xf32>
    %c0_2 = arith.constant 0 : index
    %c0_3 = arith.constant 0 : index
    %c0_4 = arith.constant 0 : index
    %2 = vector.load %arg4[%c0_2, %c0_3, %c0_4] : memref<2x32x32xf32, #tpu.memory_space<vmem>>, vector<1x32x32xf32>
    %3 = vector.shape_cast %2 : vector<1x32x32xf32> to vector<32x32xf32>
    %cst = arith.constant dense<0.000000e+00> : vector<32x32xf32>
    %4 = tpu.matmul %1, %3, %cst {dimension_numbers = #tpu.dot_dimension_numbers<[1], [0], [0], [1], [0, 0, 1, 1], [], []>} : vector<32x32xf32>, vector<32x32xf32>, vector<32x32xf32> -> vector<32x32xf32>
    %c0_5 = arith.constant 0 : index
    %c0_6 = arith.constant 0 : index
    %5 = vector.load %arg5[%c0_5, %c0_6] : memref<2x32xf32, #tpu.memory_space<vmem>>, vector<1x32xf32>
    %6 = vector.broadcast %5 : vector<1x32xf32> to vector<32x32xf32>
    %7 = arith.addf %4, %6 : vector<32x32xf32>
    %8 = arith.negf %7 : vector<32x32xf32>
    %9 = math.exp %8 : vector<32x32xf32>
    %cst_7 = arith.constant 1.000000e+00 : f32
    %10 = vector.broadcast %cst_7 : f32 to vector<32x32xf32>
    %11 = arith.addf %10, %9 : vector<32x32xf32>
    %12 = arith.divf %10, %11 : vector<32x32xf32>
    %13 = arith.mulf %7, %12 : vector<32x32xf32>
    %c1 = arith.constant 1 : index
    %c0_8 = arith.constant 0 : index
    %c0_9 = arith.constant 0 : index
    %14 = vector.load %arg4[%c1, %c0_8, %c0_9] : memref<2x32x32xf32, #tpu.memory_space<vmem>>, vector<1x32x32xf32>
    %15 = vector.shape_cast %14 : vector<1x32x32xf32> to vector<32x32xf32>
    %cst_10 = arith.constant dense<0.000000e+00> : vector<32x32xf32>
    %16 = tpu.matmul %13, %15, %cst_10 {dimension_numbers = #tpu.dot_dimension_numbers<[1], [0], [0], [1], [0, 0, 1, 1], [], []>} : vector<32x32xf32>, vector<32x32xf32>, vector<32x32xf32> -> vector<32x32xf32>
    %c1_11 = arith.constant 1 : index
    %c0_12 = arith.constant 0 : index
    %17 = vector.load %arg5[%c1_11, %c0_12] : memref<2x32xf32, #tpu.memory_space<vmem>>, vector<1x32xf32>
    %18 = vector.broadcast %17 : vector<1x32xf32> to vector<32x32xf32>
    %19 = arith.addf %16, %18 : vector<32x32xf32>
    %20 = arith.negf %19 : vector<32x32xf32>
    %21 = math.exp %20 : vector<32x32xf32>
    %cst_13 = arith.constant 1.000000e+00 : f32
    %22 = vector.broadcast %cst_13 : f32 to vector<32x32xf32>
    %23 = arith.addf %22, %21 : vector<32x32xf32>
    %24 = arith.divf %22, %23 : vector<32x32xf32>
    %25 = arith.mulf %19, %24 : vector<32x32xf32>
    %c0_14 = arith.constant 0 : index
    %c0_15 = arith.constant 0 : index
    %26 = vector.load %arg6[%c0_14, %c0_15] : memref<1x32xf32, #tpu.memory_space<vmem>>, vector<1x32xf32>
    %27 = vector.broadcast %26 : vector<1x32xf32> to vector<32x32xf32>
    %28 = arith.mulf %25, %27 : vector<32x32xf32>
    %cst_16 = arith.constant dense<0.000000e+00> : vector<32xf32>
    %29 = vector.multi_reduction <add>, %28, %cst_16 [1] : vector<32x32xf32> to vector<32xf32>
    %30 = vector.shape_cast %29 : vector<32xf32> to vector<32x1xf32>
    %c0_17 = arith.constant 0 : index
    %c0_18 = arith.constant 0 : index
    %31 = memref.load %arg7[%c0_17, %c0_18] : memref<1x1xf32, #tpu.memory_space<smem>>
    %32 = vector.broadcast %31 : f32 to vector<32x1xf32>
    %33 = arith.addf %30, %32 : vector<32x1xf32>
    %34 = arith.negf %33 : vector<32x1xf32>
    %35 = math.exp %34 : vector<32x1xf32>
    %cst_19 = arith.constant 1.000000e+00 : f32
    %36 = vector.broadcast %cst_19 : f32 to vector<32x1xf32>
    %37 = arith.addf %36, %35 : vector<32x1xf32>
    %38 = arith.divf %36, %37 : vector<32x1xf32>
    %39 = vector.shape_cast %38 : vector<32x1xf32> to vector<1x32x1xf32>
    %40 = tpu.iota {dimensions = array<i32: 1>} : vector<1x16x32xi32>
    %41 = tpu.iota {dimensions = array<i32: 2>} : vector<1x32x16xi32>
    %c0_20 = arith.constant 0 : index
    %c0_21 = arith.constant 0 : index
    %c0_22 = arith.constant 0 : index
    %42 = vector.load %arg2[%c0_20, %c0_21, %c0_22] : memref<1x1x32xi32, #tpu.memory_space<vmem>>, vector<1x1x32xi32>
    %43 = vector.broadcast %42 : vector<1x1x32xi32> to vector<1x16x32xi32>
    %44 = arith.cmpi eq, %40, %43 : vector<1x16x32xi32>
    %45 = arith.extui %44 : vector<1x16x32xi1> to vector<1x16x32xi32>
    %46 = arith.sitofp %45 : vector<1x16x32xi32> to vector<1x16x32xf32>
    %c0_23 = arith.constant 0 : index
    %c0_24 = arith.constant 0 : index
    %c0_25 = arith.constant 0 : index
    %47 = vector.load %arg3[%c0_23, %c0_24, %c0_25] : memref<1x32x1xi32, #tpu.memory_space<vmem>>, vector<1x32x1xi32>
    %48 = vector.broadcast %47 : vector<1x32x1xi32> to vector<1x32x16xi32>
    %49 = arith.cmpi eq, %41, %48 : vector<1x32x16xi32>
    %50 = arith.extui %49 : vector<1x32x16xi1> to vector<1x32x16xi32>
    %51 = arith.sitofp %50 : vector<1x32x16xi32> to vector<1x32x16xf32>
    %52 = vector.broadcast %39 : vector<1x32x1xf32> to vector<1x32x16xf32>
    %53 = arith.mulf %51, %52 : vector<1x32x16xf32>
    "tpu.trace_start"() <{level = 10 : i32, message = "gie,gej->gij"}> : () -> ()
    %cst_26 = arith.constant dense<0.000000e+00> : vector<1x16x16xf32>
    %54 = tpu.matmul %46, %53, %cst_26 {dimension_numbers = #tpu.dot_dimension_numbers<[2], [1], [1], [2], [0, 0, 0, 1, 1, 2], [0], [0]>} : vector<1x16x32xf32>, vector<1x32x16xf32>, vector<1x16x16xf32> -> vector<1x16x16xf32>
    "tpu.trace_stop"() : () -> ()
    %cst_27 = arith.constant 1.000000e-10 : f32
    %55 = vector.broadcast %cst_27 : f32 to vector<1x16x16xf32>
    %56 = arith.addf %54, %55 : vector<1x16x16xf32>
    %57 = math.log %56 : vector<1x16x16xf32>
    %c0_28 = arith.constant 0 : index
    %c0_29 = arith.constant 0 : index
    %c0_30 = arith.constant 0 : index
    %58 = vector.load %arg8[%c0_28, %c0_29, %c0_30] : memref<1x16x16xf32, #tpu.memory_space<vmem>>, vector<1x16x16xf32>
    tpu.vector_store %arg8[%c0_28, %c0_29, %c0_30], %57 {strides = array<i32>} : memref<1x16x16xf32, #tpu.memory_space<vmem>>, vector<1x16x16xf32>,
    return
  }
  func.func @transform_0(%arg0: i32) -> (i32, i32, i32) {
    %c0_i32 = arith.constant 0 : i32
    %c0_i32_0 = arith.constant 0 : i32
    %c0_i32_1 = arith.constant 0 : i32
    return %arg0, %c0_i32, %c0_i32_0 : i32, i32, i32
  }
  func.func @transform_1(%arg0: i32) -> (i32, i32, i32) {
    %c0_i32 = arith.constant 0 : i32
    %c0_i32_0 = arith.constant 0 : i32
    %c0_i32_1 = arith.constant 0 : i32
    return %arg0, %c0_i32, %c0_i32_0 : i32, i32, i32
  }
  func.func @transform_2(%arg0: i32) -> (i32, i32, i32) {
    %c0_i32 = arith.constant 0 : i32
    %c0_i32_0 = arith.constant 0 : i32
    %c0_i32_1 = arith.constant 0 : i32
    return %arg0, %c0_i32, %c0_i32_0 : i32, i32, i32
  }
  func.func @transform_3(%arg0: i32) -> (i32, i32, i32) {
    %c0_i32 = arith.constant 0 : i32
    %c0_i32_0 = arith.constant 0 : i32
    %c0_i32_1 = arith.constant 0 : i32
    %c0_i32_2 = arith.constant 0 : i32
    return %c0_i32, %c0_i32_0, %c0_i32_1 : i32, i32, i32
  }
  func.func @transform_4(%arg0: i32) -> (i32, i32) {
    %c0_i32 = arith.constant 0 : i32
    %c0_i32_0 = arith.constant 0 : i32
    %c0_i32_1 = arith.constant 0 : i32
    return %c0_i32, %c0_i32_0 : i32, i32
  }
  func.func @transform_5(%arg0: i32) -> (i32, i32) {
    %c0_i32 = arith.constant 0 : i32
    %c0_i32_0 = arith.constant 0 : i32
    %c0_i32_1 = arith.constant 0 : i32
    return %c0_i32, %c0_i32_0 : i32, i32
  }
  func.func @transform_6(%arg0: i32) -> (i32, i32) {
    %c0_i32 = arith.constant 0 : i32
    %c0_i32_0 = arith.constant 0 : i32
    %c0_i32_1 = arith.constant 0 : i32
    return %c0_i32, %c0_i32_0 : i32, i32
  }
  func.func @transform_7(%arg0: i32) -> (i32, i32, i32) {
    %c0_i32 = arith.constant 0 : i32
    %c0_i32_0 = arith.constant 0 : i32
    %c0_i32_1 = arith.constant 0 : i32
    return %arg0, %c0_i32, %c0_i32_0 : i32, i32, i32
  }
}

</mosaic_0001>

<bundles_post_ra>
// kernel: tpu_custom_call.1
= control target key start
LH: loop header
LB: loop body
LE: loop exit
PB: predicated region body
PF: predicated region fallthrough
CT: control target
= control target key end

     0   :  { %s1483_s0 = inlined_call_operand.vmem [shape: f32[2,32,32], index: 0, kind: input, shape index: {}]   ;;  %s1484_s1 = inlined_call_operand.vmem [shape: s32[2,1,32], index: 1, kind: input, shape index: {}]   ;;  %s1485_s2 = inlined_call_operand.vmem [shape: s32[2,32,1], index: 2, kind: input, shape index: {}]   ;;  %s1486_s3 = inlined_call_operand.hbm [shape: f32[2,32,32], index: 3, kind: input, shape index: {}]   ;;  %s1487_s4 = inlined_call_operand.vmem [shape: f32[2,32], index: 4, kind: input, shape index: {}]   ;;  %s1488_s5 = inlined_call_operand.vmem [shape: f32[1,32], index: 5, kind: input, shape index: {}]   ;;  %s1489_s6 = inlined_call_operand.<no memory space> [shape: f32[1,1], index: 6, kind: input, shape index: {}]   ;;  %s1490_s7 = inlined_call_operand.hbm [shape: f32[2,16,16], index: 7, kind: output, shape index: {}]  }
   0x1   :  { %12 = sst [smem:[#allocation2]] %s1489_s6 }
   0x2   :  { %13 = vsyncpa [#allocation4], 0 }
   0x3   :  { %14 = vsyncpa [#allocation5], 0 }
   0x4   :  { %16 = vsyncpa [#allocation5 + $0x1], 0  ;;  %s1292_s26 = smov 0   ;;  %s1294_s27 = smov 0  }
   0x5   :  { %s1296_s28 = smov 0   ;;  %s1298_s29 = smov 0  }
   0x6 LB: > { %s1313_s6 = sadd.s32 4294967295, %s1239_s29   ;;  %s899_s30 = sadd.s32 4294967294, %s1239_s29   ;;  %s1239_s29 = sphi %s1298_s29, %s1506_s29   ;;  %s1235_s28 = sphi %s1296_s28, %s1505_s28   ;;  %s1231_s27 = sphi %s1294_s27, %s1504_s27   ;;  %s1227_s26 = sphi %s1292_s26, %s1503_s26  }
   0x7   : > { %s1317_s8 = sadd.s32 1, %s1239_s29   ;;  %s191_s9 = sadd.s32 1, %s1235_s28 }
   0x8   : > { %s188_s10 = ssub.s32 %s1239_s29, %s1317_s8  ;;  %p201_p0 = scmp.ne.s32.totalorder %s1235_s28, %s1231_s27 }
   0x9   : > { %p189_p1 = scmp.eq.s32.totalorder %s188_s10, 0  ;;  %p202_p2 = scmp.eq.s32.totalorder %s1313_s6, 1 }
   0xa   : > { %p207_p3 = scmp.ne.s32.totalorder %s1231_s27, %s1227_s26  ;;  %p208_p4 = scmp.eq.s32.totalorder %s899_s30, 1 }
   0xb   : > { %s1328_s11 = scalar_select %p189_p1, %s1235_s28, %s191_s9  }
   0xc   : > { %p1330_p5 = por %p202_p2, %p201_p0  ;;  %p1334_p6 = por %p208_p4, %p207_p3 }
   0xd   : > { %p900_p7 = scmp.ge.s32.totalorder %s1239_s29, 1  ;;  %p215_p8 = scmp.lt.s32.totalorder %s1239_s29, 3 }
   0xe   : > { %s1494_s12 = scalar_select %p1330_p5, 1, 0 }
   0xf   : > { %s1495_s13 = scalar_select %p1334_p6, 1, 0 }
  0x10   : > { %p1491_p9 = scmp.eq.s32.totalorder %s1313_s6, 0  ;;  %p1341_p10 = pnand %p900_p7, %p215_p8 }
  0x11   : > { %s1241_s15 = smov [#allocation3]   ;;  %s1145_s20 = scalar_lea.hbm %s1486_s3, 1024 }
  0x12   : > { %s1496_s14 = scalar_select %p1341_p10, 1, 0 }
  0x13   : > { %s227_s16 = sshll.u32 %s1241_s15, 4  ;;  %p1041_p11 = pneg %p1341_p10  ;;  %s228_s16 = int_to_ptr.vmem [resolvable:$true] %s227_s16 }
  0x14   : > { %p1146_p13 = scmp.ne.s32.totalorder %s1486_s3, %s1145_s20  ;;  %p1152_p3 = scmp.lt.u32.totalorder %s1145_s20, %s1486_s3 }
  0x15   : > { %p1349_p12 = pnand %p1491_p9, %p1041_p11 }
  0x17   : > { %p1147_p0 = pneg %p1349_p12 }
  0x19   : > { %p1148_p1 = pnand %p1147_p0, %p1146_p13 }
  0x1b   : > { %p1149_p2 = pneg %p1148_p1 }
  0x1d   : > { %p1154_p4 = pnand %p1152_p3, %p1149_p2 }
  0x1f   : > { %1157 = shalt.err (!%p1154_p4)
}
  0x20   : > { %s1158_s25 = scalar_lea.vmem %s228_s16, 1024  ;;  %p1166_p9 = scmp.lt.s32.totalorder %s228_s16, %s228_s16 }
  0x21   : > { %p1159_p7 = scmp.ne.s32.totalorder %s228_s16, %s1158_s25  ;;  %p1167_p6 = scmp.lt.s32.totalorder %s1158_s25, %s1158_s25 }
  0x23   : > { %p1161_p8 = pnand %p1159_p7, %p1147_p0  ;;  %p1168_p5 = por %p1167_p6, %p1166_p9 }
  0x25   : > { %p1162_p11 = pneg %p1161_p8 }
  0x27   : > { %p1169_p10 = pnand %p1168_p5, %p1162_p11 }
  0x29   : > { %1172 = shalt.err (!%p1169_p10)
}
  0x2a   : > { %s1242_s30 = smov 128   ;;  %s1243_s9 = smov 8  }
  0x2b   : > { %1044 = dma.hbm_to_vmem [thread:$0]  (!%p1349_p12), %s1486_s3, 1024, %s228_s16, [#allocation4], %s1242_s30, %s1242_s30, %s1243_s9  }
  0x2c   : > { %p1498_p13 = scmp.ne.s32.totalorder %s1496_s14, 0 }
  0x2d   : > { %p1499_p1 = scmp.eq.s32.totalorder (!%p1498_p13), %s1313_s6, 0 }
  0x2e   : > { %274 = sbr.rel (%p1498_p13) target bundleno = 984 (0x3d8), region = 48 }
  0x35   : > { %1218 = dma.done.wait (%p1499_p1), [#allocation4], 1024   ;;  %p1500_p0 = pmov %p1499_p1 }
  0x36   : > { %p314_p5 = scmp.lt.s32.totalorder %s1313_s6, 1  ;;  %vm340_vm0 = vcmask 261120   ;;  %v331_v0 = vld [vmem:[#allocation3] sm:$0xff]  ;;  %v332_v1 = vld [vmem:[#allocation3 + $0x8] sm:$0xff]  ;;  %v333_v2 = vld [vmem:[#allocation3 + $0x10] sm:$0xff]  ;;  %v1244_v16 = vmov 0  }
  0x37   : > { %1220 = vsyncadd (%p1500_p0), [#allocation4], 4294966272  ;;  %v1011_v3 = vpack.c.bf16 %v332_v1, %v331_v0  ;;  %v334_v4 = vld [vmem:[#allocation3 + $0x18] sm:$0xff]  ;;  %v467_v10 = vld [vmem:[#allocation3 + $0x20] sm:$0xff]  ;;  %1092 = vset.pattern.permute.xlu1 %v1244_v16  ;;  %1091 = vset.pattern.permute.xlu0 %v1244_v16  ;;  %s624_s16 = sld [smem:[#allocation2]]  ;;  %s949_s20 = sshll.u32 %s1313_s6, 8 }
  0x38   : > { %s1377_s18 = scalar_select %p314_p5, %s1313_s6, 1  ;;  %v1015_v6 = vpack.c.bf16 %v334_v4, %v333_v2  ;;  %v468_v11 = vld [vmem:[#allocation3 + $0x28] sm:$0xff]  ;;  %v469_v13 = vld [vmem:[#allocation3 + $0x30] sm:$0xff]  ;;  %v470_v14 = vld [vmem:[#allocation3 + $0x38] sm:$0xff]  ;;  %vm787_vm7 = vcmask 130048  }
  0x39   : > { %1012 = vmatprep.subr.bf16.mxu0 %v1011_v3  ;;  %v1019_v12 = vpack.c.bf16 %v468_v11, %v467_v10  ;;  %v1023_v15 = vpack.c.bf16 %v470_v14, %v469_v13  ;;  %v910_v19 = vld [vmem:[%s1487_s4] ss:$0 sm:$0xff]  ;;  %v919_v48 = vld [vmem:[%s1487_s4 + $0x1] ss:$0 sm:$0xff]  ;;  %s1438_s25 = scalar_lea.hbm %s1490_s7, %s949_s20  ;;  %p1501_p9 = scmp.ne.s32.totalorder %s1494_s12, 0 }
  0x3a   : > { %s947_s17 = sshll.u32 %s1377_s18, 5  ;;  %1014 = vmatpush3.bf16.msra.mxu0 %v1011_v3  ;;  %s321_s19 = scalar_lea.vmem %s1484_s1, %s1377_s18 }
  0x3b   : > { %s318_s14 = scalar_lea.vmem %s1483_s0, %s947_s17  ;;  %1016 = vmatprep.subr.bf16.mxu0 %v1015_v6  ;;  %1020 = vmatprep.subr.bf16.mxu1 %v1019_v12  ;;  %s1394_s22 = scalar_lea.vmem %s1485_s2, %s947_s17 }
  0x3c   : > { %v327_v5 = vld [vmem:[%s318_s14] sm:$0xff]  ;;  %v328_v7 = vld [vmem:[%s318_s14 + $0x8] sm:$0xff]  ;;  %v329_v8 = vld [vmem:[%s318_s14 + $0x10] sm:$0xff]  ;;  %1022 = vmatpush3.bf16.msra.mxu1 %v1019_v12  ;;  %s311_s18 = sand.u32 1, %s1231_s27   ;;  %s1246_s9 = smov [#allocation6]  }
  0x3d   : > { %980 = vmatprep.mubr.msk.f32.mxu0 %vm340_vm0, %v327_v5  ;;  %v330_v9 = vld [vmem:[%s318_s14 + $0x18] sm:$0xff]  ;;  %1024 = vmatprep.subr.bf16.mxu1 %v1023_v15  ;;  %v671_v17 = vld [vmem:[%s1394_s22 + $0x8] sm:$0xff]  ;;  %v672_v18 = vld [vmem:[%s1394_s22 + $0x10] sm:$0xff]  ;;  %s905_s14 = sshll.u32 %s311_s18, 4  ;;  %s1442_s6 = scalar_lea.sflag [#allocation5], %s311_s18 }
  0x3e   : > { %1018 = vmatpush3.bf16.msra.mxu0 %v1015_v6  ;;  %678 = vperm.xlu1 %1092, %v671_v17   ;;  %s313_s21 = scalar_lea.vmem [#allocation6], %s905_s14  ;;  %s1177_s10 = sshll.u32 %s1246_s9, 4  ;;  %s1178_s10 = int_to_ptr.vmem [resolvable:$false] %s1177_s10 }
  0x3f   : > { %s1179_s15 = scalar_lea.vmem %s1178_s10, 512 }
  0x40   : > { %1026 = vmatpush3.bf16.msra.mxu1 %v1023_v15 }
  0x41   : > { %981 = vmatmul.mubr.msk.f32.vlgmr.msra.gmra.mrb[0].mxu0 %vm340_vm0, %v328_v7  ;;  %v928_v7 = vld [vmem:[%s1488_s5] ss:$0 sm:$0xff] }
  0x42   : > { %983 = vmatprep.mubr.msk.f32.mxu0 %vm340_vm0, %v329_v8  ;;  %681 = vperm.xlu1 %1092, %v672_v18  }
  0x45   : > { %984 = vmatmul.mubr.msk.f32.gmra.mrb[2].mxu0 %vm340_vm0, %v330_v9 }
 0x114   : > { %v982_v20 = vpop.f32.mrb[0].mxu0 }
 0x115   : > { %v425_v21 = vadd.f32 %v982_v20, %v910_v19  ;;  %v419_v22 = vpop.f32.mrb[1].mxu0 }
 0x116   : > { %v420_v23 = vadd.f32 %v910_v19, %v419_v22  ;;  %v673_v22 = vld [vmem:[%s1394_s22 + $0x18] sm:$0xff] }
 0x117   : > { %v916_v24 = vmul.f32 -1.442695, %v425_v21 }
 0x118   : > { %v915_v25 = vmul.f32 -1.442695, %v420_v23  ;;  %v985_v26 = vpop.f32.mrb[2].mxu0 }
 0x119   : > { %1093 = vpow2.f32 %v916_v24  ;;  %v435_v27 = vadd.f32 %v985_v26, %v910_v19  ;;  %v429_v28 = vpop.f32.mrb[3].mxu0  ;;  %v654_v24 = vlaneseq }
 0x11a   : > { %1095 = vpow2.f32 %v915_v25  ;;  %v430_v29 = vadd.f32 %v910_v19, %v429_v28  ;;  %v1245_v28 = vmov 0.0  }
 0x11b   : > { %v918_v30 = vmul.f32 -1.442695, %v435_v27  ;;  %v655_v25 = vshrl.u32 %v654_v24, 7 }
 0x11c   : > { %v917_v31 = vmul.f32 -1.442695, %v430_v29 }
 0x11d   : > { %1097 = vpow2.f32 %v918_v30  ;;  %v1421_v26 = vadd.s32 8, %v655_v25  ;;  %v679_v30 = vpop.permute.xlu1 %678 }
 0x11e   : > { %1099 = vpow2.f32 %v917_v31  ;;  %v625_v31 = vstv %s624_s16 }
 0x123   : > { %v1094_v32 = vpop.eup %1093 }
 0x124   : > { %v1096_v33 = vpop.eup %1095  ;;  %v451_v34 = vadd.f32 1.0, %v1094_v32  ;;  %v682_v32 = vpop.permute.xlu1 %681 }
 0x125   : > { %v450_v35 = vadd.f32 1.0, %v1096_v33 }
 0x126   : > { %1101 = vrcp.f32 %v451_v34 }
 0x127   : > { %v1098_v36 = vpop.eup %1097  ;;  %1103 = vrcp.f32 %v450_v35 }
 0x128   : > { %v1100_v37 = vpop.eup %1099  ;;  %v453_v38 = vadd.f32 1.0, %v1098_v36 }
 0x129   : > { %v452_v39 = vadd.f32 1.0, %v1100_v37 }
 0x12a   : > { %1105 = vrcp.f32 %v453_v38 }
 0x12b   : > { %1107 = vrcp.f32 %v452_v39 }
 0x130   : > { %v1102_v40 = vpop.eup %1101 }
 0x131   : > { %v1104_v41 = vpop.eup %1103  ;;  %v463_v43 = vmul.f32 %v1102_v40, %v425_v21 }
 0x132   : > { %v462_v42 = vmul.f32 %v1104_v41, %v420_v23  ;;  %v670_v23 = vld [vmem:[%s1394_s22] sm:$0xff]  ;;  %s804_s22 = sshll.u32 %s313_s21, 4  ;;  %s1440_s22 = int_to_ptr.vmem [resolvable:$true] %s804_s22 }
 0x133   : > { %s1173_s30 = scalar_lea.vmem %s1440_s22, 256  ;;  %p1180_p2 = scmp.lt.s32.totalorder %s1440_s22, %s1178_s10 }
 0x134   : > { %v1106_v44 = vpop.eup %1105  ;;  %994 = vmatprep.mubr.msk.f32.mxu1 %vm340_vm0, %v462_v42  ;;  %p1174_p6 = scmp.ne.s32.totalorder %s1440_s22, %s1173_s30  ;;  %p1181_p3 = scmp.lt.s32.totalorder %s1179_s15, %s1173_s30 }
 0x135   : > { %v1108_v45 = vpop.eup %1107  ;;  %995 = vmatmul.mubr.msk.f32.vlgmr.msra.gmra.mrb[0].mxu1 %vm340_vm0, %v463_v43  ;;  %v465_v47 = vmul.f32 %v1106_v44, %v435_v27  ;;  %v1423_v27 = vld [vmem:[%s321_s19] ss:$0 sm:$0xff] }
 0x136   : > { %v464_v46 = vmul.f32 %v1108_v45, %v430_v29  ;;  %vm664_vm1 = vcmp.eq.s32.totalorder %v655_v25, %v1423_v27  ;;  %vm665_vm2 = vcmp.eq.s32.totalorder %v1421_v26, %v1423_v27  ;;  %p1175_p10 = pnand %p1174_p6, %p1501_p9  ;;  %p1182_p4 = por %p1181_p3, %p1180_p2 }
 0x137   : > { %v934_v29 = vsel %vm664_vm1, 1.0, %v1245_v28 }
 0x138   : > { %997 = vmatprep.mubr.msk.f32.mxu1 %vm340_vm0, %v464_v46  ;;  %1008 = vmatprep.mubr.msk.f32.mxu0 %vm340_vm0, %v934_v29  ;;  %p1176_p12 = pneg %p1175_p10 }
 0x139   : > { %998 = vmatmul.mubr.msk.f32.gmra.mrb[2].mxu1 %vm340_vm0, %v465_v47 }
 0x13a   : > { %p1183_p7 = pnand %p1182_p4, %p1176_p12 }
 0x208   : > { %v996_v49 = vpop.f32.mrb[0].mxu1 }
 0x209   : > { %v560_v50 = vadd.f32 %v996_v49, %v919_v48  ;;  %v554_v51 = vpop.f32.mrb[1].mxu1 }
 0x20a   : > { %v555_v52 = vadd.f32 %v919_v48, %v554_v51 }
 0x20b   : > { %v925_v53 = vmul.f32 -1.442695, %v560_v50 }
 0x20c   : > { %v924_v54 = vmul.f32 -1.442695, %v555_v52  ;;  %v999_v55 = vpop.f32.mrb[2].mxu1 }
 0x20d   : > { %1109 = vpow2.f32 %v925_v53  ;;  %v570_v56 = vadd.f32 %v999_v55, %v919_v48  ;;  %v564_v57 = vpop.f32.mrb[3].mxu1 }
 0x20e   : > { %1111 = vpow2.f32 %v924_v54  ;;  %v565_v58 = vadd.f32 %v919_v48, %v564_v57  ;;  %v658_v54 = vand.u32 127, %v654_v24 }
 0x20f   : > { %v927_v59 = vmul.f32 -1.442695, %v570_v56 }
 0x210   : > { %v926_v60 = vmul.f32 -1.442695, %v565_v58  ;;  %vm687_vm4 = vcmp.eq.s32.totalorder %v658_v54, %v679_v30  ;;  %vm688_vm5 = vcmp.eq.s32.totalorder %v658_v54, %v682_v32 }
 0x211   : > { %1113 = vpow2.f32 %v927_v59  ;;  %v937_v59 = vsel %vm687_vm4, 1.0, %v1245_v28 }
 0x212   : > { %1115 = vpow2.f32 %v926_v60 }
 0x217   : > { %v1110_v61 = vpop.eup %1109 }
 0x218   : > { %v1112_v62 = vpop.eup %1111  ;;  %v586_v63 = vadd.f32 1.0, %v1110_v61 }
 0x219   : > { %v585_v0 = vadd.f32 1.0, %v1112_v62 }
 0x21a   : > { %1117 = vrcp.f32 %v586_v63 }
 0x21b   : > { %v1114_v1 = vpop.eup %1113  ;;  %1119 = vrcp.f32 %v585_v0  ;;  %v938_v0 = vsel %vm688_vm5, 1.0, %v1245_v28 }
 0x21c   : > { %v1116_v2 = vpop.eup %1115  ;;  %v588_v3 = vadd.f32 1.0, %v1114_v1 }
 0x21d   : > { %v587_v4 = vadd.f32 1.0, %v1116_v2 }
 0x21e   : > { %1121 = vrcp.f32 %v588_v3 }
 0x21f   : > { %1123 = vrcp.f32 %v587_v4 }
 0x224   : > { %v1118_v5 = vpop.eup %1117 }
 0x225   : > { %v1120_v6 = vpop.eup %1119  ;;  %v598_v8 = vmul.f32 %v1118_v5, %v560_v50 }
 0x226   : > { %v597_v9 = vmul.f32 %v1120_v6, %v555_v52  ;;  %v935_v6 = vsel %vm665_vm2, 1.0, %v1245_v28 }
 0x227   : > { %v609_v16 = vmul.f32 %v928_v7, %v598_v8 }
 0x228   : > { %v1122_v10 = vpop.eup %1121  ;;  %v608_v11 = vmul.f32 %v928_v7, %v597_v9 }
 0x229   : > { %v1124_v12 = vpop.eup %1123  ;;  %v600_v13 = vmul.f32 %v1122_v10, %v570_v56  ;;  %v615_v20 = vsel %vm340_vm0, %v609_v16, 0.0 }
 0x22a   : > { %v599_v14 = vmul.f32 %v1124_v12, %v565_v58  ;;  %v612_v15 = vsel %vm340_vm0, %v608_v11, 0.0 }
 0x22b   : > { %613 = vadd.xlane.f32.xlu0 %v612_v15  ;;  %v611_v17 = vmul.f32 %v928_v7, %v600_v13 }
 0x22c   : > { %v610_v19 = vmul.f32 %v928_v7, %v599_v14 }
 0x22d   : > { %v621_v18 = vsel %vm340_vm0, %v611_v17, 0.0 }
 0x22e   : > { %622 = vadd.xlane.f32.xlu1 %v621_v18  ;;  %v618_v21 = vsel %vm340_vm0, %v610_v19, 0.0 }
 0x22f   : > { %616 = vadd.xlane.f32.xlu0 %v615_v20 }
 0x232   : > { %619 = vadd.xlane.f32.xlu1 %v618_v21 }
 0x243   : > { %684 = vperm.xlu1 %1092, %v673_v22  }
 0x245   : > { %675 = vperm.xlu0 %1091, %v670_v23  }
 0x2b8   : > { %v614_v33 = vpop.xlane.xlu0 %613 }
 0x2b9   : > { %v626_v34 = vadd.f32 %v625_v31, %v614_v33 }
 0x2bb   : > { %v929_v35 = vmul.f32 -1.442695, %v626_v34  ;;  %v623_v36 = vpop.xlane.xlu1 %622 }
 0x2bc   : > { %v629_v37 = vadd.f32 %v625_v31, %v623_v36  ;;  %v617_v38 = vpop.xlane.xlu0 %616 }
 0x2bd   : > { %1125 = vpow2.f32 %v929_v35  ;;  %v627_v39 = vadd.f32 %v625_v31, %v617_v38 }
 0x2be   : > { %v932_v40 = vmul.f32 -1.442695, %v629_v37 }
 0x2bf   : > { %v930_v41 = vmul.f32 -1.442695, %v627_v39  ;;  %v620_v42 = vpop.xlane.xlu1 %619 }
 0x2c0   : > { %1127 = vpow2.f32 %v932_v40  ;;  %v628_v43 = vadd.f32 %v625_v31, %v620_v42 }
 0x2c1   : > { %1129 = vpow2.f32 %v930_v41 }
 0x2c2   : > { %v931_v44 = vmul.f32 -1.442695, %v628_v43 }
 0x2c3   : > { %v685_v55 = vpop.permute.xlu1 %684 }
 0x2c4   : > { %1131 = vpow2.f32 %v931_v44  ;;  %v676_v53 = vpop.permute.xlu0 %675  ;;  %vm689_vm6 = vcmp.eq.s32.totalorder %v658_v54, %v685_v55 }
 0x2c5   : > { %vm686_vm3 = vcmp.eq.s32.totalorder %v658_v54, %v676_v53  ;;  %v939_v1 = vsel %vm689_vm6, 1.0, %v1245_v28 }
 0x2c6   : > { %v936_v57 = vsel %vm686_vm3, 1.0, %v1245_v28 }
 0x2c7   : > { %v1126_v45 = vpop.eup %1125 }
 0x2c8   : > { %v642_v46 = vadd.f32 1.0, %v1126_v45 }
 0x2ca   : > { %v1128_v47 = vpop.eup %1127  ;;  %1133 = vrcp.f32 %v642_v46 }
 0x2cb   : > { %v1130_v48 = vpop.eup %1129  ;;  %v645_v49 = vadd.f32 1.0, %v1128_v47 }
 0x2cc   : > { %v643_v50 = vadd.f32 1.0, %v1130_v48 }
 0x2ce   : > { %v1132_v51 = vpop.eup %1131  ;;  %1135 = vrcp.f32 %v643_v50 }
 0x2cf   : > { %1137 = vrcp.f32 %v645_v49  ;;  %v644_v52 = vadd.f32 1.0, %v1132_v51 }
 0x2d1   : > { %1139 = vrcp.f32 %v644_v52 }
 0x2d4   : > { %v1134_v56 = vpop.eup %1133 }
 0x2d5   : > { %v698_v61 = vmul.f32 %v1134_v56, %v936_v57 }
 0x2d8   : > { %v1136_v58 = vpop.eup %1135 }
 0x2d9   : > { %v1138_v60 = vpop.eup %1137  ;;  %v699_v62 = vmul.f32 %v1136_v58, %v937_v59 }
 0x2da   : > { %v701_v3 = vmul.f32 %v1138_v60, %v939_v1 }
 0x2db   : > { %v1140_v63 = vpop.eup %1139  ;;  %v1027_v2 = vpack.c.bf16 %v699_v62, %v698_v61 }
 0x2dc   : > { %v700_v4 = vmul.f32 %v1140_v63, %v938_v0 }
 0x2dd   : > { %1028 = vmatprep.subr.bf16.mxu0 %v1027_v2 }
 0x2de   : > { %1030 = vmatpush3.bf16.msra.mxu0 %v1027_v2  ;;  %v1031_v5 = vpack.c.bf16 %v701_v3, %v700_v4 }
 0x2e0   : > { %1032 = vmatprep.subr.bf16.mxu0 %v1031_v5 }
 0x2e2   : > { %1034 = vmatpush3.bf16.msra.mxu0 %v1031_v5 }
 0x2e5   : > { %1009 = vmatmul.mubr.msk.f32.vlgmr.msra.gmra.mrb[4].mxu0 %vm340_vm0, %v935_v6 }
 0x3b8   : > { %v1010_v7 = vpop.f32.mrb[4].mxu0 }
 0x3b9   : > { %v780_v8 = vadd.f32 1e-10, %v1010_v7  ;;  %v774_v9 = vpop.f32.mrb[5].mxu0 }
 0x3ba   : > { %v775_v10 = vadd.f32 1e-10, %v774_v9 }
 0x3bb   : > { %1141 = vlog2.f32 %v780_v8 }
 0x3bc   : > { %1143 = vlog2.f32 %v775_v10 }
 0x3c5   : > { %v1142_v11 = vpop.eup %1141 }
 0x3c6   : > { %v1144_v12 = vpop.eup %1143  ;;  %v786_v13 = vmul.f32 0.6931472, %v1142_v11 }
 0x3c7   : > { %v784_v14 = vmul.f32 0.6931472, %v1144_v12 }
 0x3c8   : > { %789 = vst.msk [vmem:[%s313_s21 + $0x8] sm:$0xff] %vm787_vm7, %v786_v13 }
 0x3c9   : > { %788 = vst.msk [vmem:[%s313_s21] sm:$0xff] %vm787_vm7, %v784_v14 }
 0x3ca   : > { %1186 = shalt.err (!%p1183_p7)
}
 0x3cb   : > { %s1187_s17 = scalar_lea.hbm %s1438_s25, 256  ;;  %s1191_s18 = scalar_lea.hbm %s1490_s7, 512 }
 0x3cc   : > { %p1188_p8 = scmp.ne.s32.totalorder %s1438_s25, %s1187_s17  ;;  %p1192_p1 = scmp.lt.u32.totalorder %s1438_s25, %s1490_s7 }
 0x3cd   : > { %p1193_p0 = scmp.lt.u32.totalorder %s1191_s18, %s1187_s17  ;;  %p1195_p6 = scmp.lt.u32.totalorder %s1187_s17, %s1438_s25 }
 0x3ce   : > { %p1189_p11 = pnand %p1188_p8, %p1501_p9 }
 0x3cf   : > { %p1194_p5 = por %p1193_p0, %p1192_p1 }
 0x3d0   : > { %p1190_p13 = pneg %p1189_p11 }
 0x3d1   : > { %p1196_p10 = por %p1195_p6, %p1194_p5 }
 0x3d3   : > { %p1197_p12 = pnand %p1196_p10, %p1190_p13 }
 0x3d5   : > { %1200 = shalt.err (!%p1197_p12)
}
 0x3d6   : > { %s1247_s21 = smov 128   ;;  %s1248_s23 = smov 8  }
 0x3d7   : > { %1039 = dma.vmem_to_hbm [thread:$0]  (%p1501_p9), %s1440_s22, 256, %s1438_s25, %s1442_s6, %s1247_s21, %s1247_s21, %s1248_s23  }
 0x3d8 PF: > { %p1051_p2 = scmp.ge.s32.totalorder %s1239_s29, 2  ;;  %s819_s24 = sand.u32 1, %s1227_s26  }
 0x3d9   : > { %p1502_p3 = scmp.ne.s32.totalorder %s1495_s13, 0  ;;  %s820_s30 = scalar_lea.sflag [#allocation5], %s819_s24 }
 0x3db   : > { %p1046_p4 = pnand %p1051_p2, %p1502_p3 }
 0x3dd   : > { %1222 = dma.done.wait (!%p1046_p4), %s820_s30, 256  }
 0x3de   : > { %1224 = vsyncadd (!%p1046_p4), %s820_s30, 4294967040  ;;  %p19_p7 = scmp.ge.s32.totalorder %s1317_s8, 4   ;;  %s1503_s26 = smov %s1231_s27 }
 0x3df   : > { %s1504_s27 = smov %s1235_s28  ;;  %s1505_s28 = smov %s1328_s11 }
 0x3e0   : > { %s1506_s29 = smov %s1317_s8  ;;  %21 = sbr.rel (!%p19_p7) target bundleno = 6 (0x6), region = 95 }
 0x3e7   :  { %825 = vsyncpa [#allocation4], 1 }
 0x3e8   :  { %827 = vsyncpa [#allocation4 + $0x1], 1 }
 0x3e9   :  { %828 = vsyncpa [#allocation5], 1 }
 0x3ea   :  { %830 = vsyncpa [#allocation5 + $0x1], 1 }

</bundles_post_ra>
